<compile_context>
chip_gen: v7x
topology: tpu7x:2x2x1
jax: 0.10.0
libtpu: 0.0.40
codegen_flags: <defaults>
</compile_context>

<pallas_src>
import functools

import jax
import jax.numpy as jnp
import numpy as np
from jax.experimental import pallas as pl
from jax.experimental.pallas import tpu as pltpu


def _round_up(v, m):
    return ((v + m - 1) // m) * m


def _dropout_nd_kernel(bits_ref, x_ref, o_ref, *, threshold, scale):
    """Elementwise dropout hot path.

    bits_ref: (ROW_TILE, 1) int32 when the mask is tied across length,
              (ROW_TILE, L_TILE) int32 otherwise (31 random bits per entry).
    x_ref / o_ref: (ROW_TILE, L_TILE) in the input dtype.
    """
    keep = bits_ref[...] < jnp.int32(threshold)
    mask = jnp.where(
        keep,
        jnp.asarray(scale, dtype=x_ref.dtype),
        jnp.asarray(0, dtype=x_ref.dtype),
    )
    # Single multiply in x's dtype; (R,1) mask broadcasts across lanes for tie=True.
    o_ref[...] = x_ref[...] * mask


def dropout_nd(x, *, p=0.5, tie=True, transposed=True, training=True, seed=0):
    """Pallas equivalent of DropoutNd.forward.

    x: (batch, dim, lengths...) if transposed else (batch, lengths..., dim).
    """
    if p < 0 or p >= 1:
        raise ValueError(
            "dropout probability has to be in [0, 1), but got {}".format(p)
        )
    if not training:
        return x
    if p == 0.0:
        # keep_prob == 1, scale == 1 -> identity.
        return x

    if not transposed:
        # 'b ... d -> b d ...'
        x = jnp.moveaxis(x, -1, 1)

    orig_shape = x.shape
    B, C = int(x.shape[0]), int(x.shape[1])
    L = 1
    for s in x.shape[2:]:
        L *= int(s)
    L = max(L, 1)

    R = B * C
    x2 = x.reshape(R, L)

    # ---- tiling --------------------------------------------------------
    Lp = _round_up(L, 128)
    if Lp <= 2048:
        L_TILE = Lp
    else:
        Lp = _round_up(Lp, 512)
        L_TILE = next(t for t in (2048, 1024, 512) if Lp % t == 0)

    Rp = _round_up(R, 8)
    # Keep one f32 data block <= ~1 MiB so (bits + in + out) double-buffered
    # stays a few MiB of VMEM on every chip generation.
    max_rows = max(8, ((262144 // L_TILE) // 8) * 8)
    ROW_TILE = 8
    for cand in (256, 128, 64, 32, 16, 8):
        if cand <= max_rows and Rp % cand == 0:
            ROW_TILE = cand
            break

    if (Rp, Lp) != (R, L):
        x2 = jnp.pad(x2, ((0, Rp - R), (0, Lp - L)))

    # ---- random bits (host-side; see TODO above) ------------------------
    keep_prob = 1.0 - float(p)
    threshold = min(int(keep_prob * (1 << 31)), (1 << 31) - 1)
    scale = 1.0 / keep_prob

    key = jax.random.PRNGKey(seed)
    bits_shape = (Rp, 1) if tie else (Rp, Lp)
    raw = jax.random.bits(key, bits_shape, dtype=jnp.uint32)
    bits = jnp.right_shift(raw, 1).astype(jnp.int32)  # 31 bits, sign-safe compare

    # ---- kernel launch ---------------------------------------------------
    grid = (Rp // ROW_TILE, Lp // L_TILE)
    if tie:
        bits_block = (ROW_TILE, 1)
        bits_index = lambda r, l: (r, 0)
    else:
        bits_block = (ROW_TILE, L_TILE)
        bits_index = lambda r, l: (r, l)

    kernel = functools.partial(
        _dropout_nd_kernel, threshold=threshold, scale=scale
    )

    out2 = pl.pallas_call(
        kernel,
        out_shape=jax.ShapeDtypeStruct((Rp, Lp), x2.dtype),
        grid=grid,
        in_specs=[
            pl.BlockSpec(bits_block, bits_index),
            pl.BlockSpec((ROW_TILE, L_TILE), lambda r, l: (r, l)),
        ],
        out_specs=pl.BlockSpec((ROW_TILE, L_TILE), lambda r, l: (r, l)),
        compiler_params=pltpu.CompilerParams(
            dimension_semantics=("parallel", "parallel"),
            vmem_limit_bytes=32 * 1024 * 1024,
        ),
    )(bits, x2)

    out = out2[:R, :L].reshape(orig_shape)
    if not transposed:
        # 'b d ... -> b ... d'
        out = jnp.moveaxis(out, 1, -1)
    return out


if __name__ == "__main__":
    key = jax.random.PRNGKey(0)
    B, C, H, W = 2, 4, 16, 16
    p = 0.5
    scale = 1.0 / (1.0 - p)
    x = jax.random.normal(key, (B, C, H, W), dtype=jnp.float32)

    # ---- training mode, tied mask (Dropout2d-style), NCHW layout ---------
    y = dropout_nd(x, p=p, tie=True, transposed=True, training=True, seed=1234)
    y = jax.block_until_ready(y)
    assert y.shape == x.shape and y.dtype == x.dtype

    xf = np.asarray(x).reshape(B, C, -1)
    yf = np.asarray(y).reshape(B, C, -1)
    ok = True
    for b in range(B):
        for c in range(C):
            if np.allclose(yf[b, c], 0.0):
                continue  # dropped channel
            if not np.allclose(yf[b, c], xf[b, c] * scale, rtol=1e-5, atol=1e-5):
                ok = False
    assert ok, "tied dropout mask semantics violated"

    # ---- training mode, untied (per-element) mask -------------------------
    y_u = dropout_nd(x, p=p, tie=False, transposed=True, training=True, seed=7)
    y_u = jax.block_until_ready(y_u)
    yu = np.asarray(y_u)
    xs = np.asarray(x) * scale
    assert np.all(
        np.isclose(yu, 0.0, atol=1e-6) | np.isclose(yu, xs, rtol=1e-5, atol=1e-5)
    ), "untied dropout mask semantics violated"

    # ---- non-transposed layout (batch, lengths..., dim) --------------------
    x_nt = jnp.moveaxis(x, 1, -1)
    y_nt = dropout_nd(x_nt, p=p, tie=True, transposed=False, training=True, seed=3)
    y_nt = jax.block_until_ready(y_nt)
    assert y_nt.shape == x_nt.shape and y_nt.dtype == x_nt.dtype

    # ---- eval mode: identity passthrough ----------------------------------
    y_eval = dropout_nd(x, p=p, tie=True, transposed=True, training=False)
    assert jnp.allclose(y_eval, x)

    print("KERNEL_OK")
</pallas_src>

<mosaic_0001>
module attributes {stable_mosaic.version = 11 : i64} {
  func.func @_dropout_nd_kernel(%arg0: i32, %arg1: i32, %arg2: memref<8x1xi32, #tpu.memory_space<vmem>>, %arg3: memref<8x256xf32, #tpu.memory_space<vmem>>, %arg4: memref<8x256xf32, #tpu.memory_space<vmem>>) attributes {dimension_semantics = [#tpu.dimension_semantics<parallel>, #tpu.dimension_semantics<parallel>], iteration_bounds = array<i64: 1, 1>, scalar_prefetch = 0 : i64, scratch_operands = 0 : i64, tpu.core_type = #tpu.core_type<tc>, window_params = [{transform_indices = @transform_0, window_bounds = array<i64: 8, 1>}, {transform_indices = @transform_1, window_bounds = array<i64: 8, 256>}, {transform_indices = @transform_2, window_bounds = array<i64: 8, 256>}]} {
    %c0 = arith.constant 0 : index
    %c0_0 = arith.constant 0 : index
    %0 = vector.load %arg2[%c0, %c0_0] : memref<8x1xi32, #tpu.memory_space<vmem>>, vector<8x1xi32>
    %c1073741824_i32 = arith.constant 1073741824 : i32
    %1 = vector.broadcast %c1073741824_i32 : i32 to vector<8x1xi32>
    %2 = arith.cmpi slt, %0, %1 : vector<8x1xi32>
    %cst = arith.constant 2.000000e+00 : f32
    %cst_1 = arith.constant 0.000000e+00 : f32
    %3 = vector.broadcast %cst : f32 to vector<8x1xf32>
    %4 = vector.broadcast %cst_1 : f32 to vector<8x1xf32>
    %5 = arith.select %2, %3, %4 : vector<8x1xi1>, vector<8x1xf32>
    %c0_2 = arith.constant 0 : index
    %c0_3 = arith.constant 0 : index
    %6 = vector.load %arg3[%c0_2, %c0_3] : memref<8x256xf32, #tpu.memory_space<vmem>>, vector<8x256xf32>
    %7 = vector.broadcast %5 : vector<8x1xf32> to vector<8x256xf32>
    %8 = arith.mulf %6, %7 : vector<8x256xf32>
    %c0_4 = arith.constant 0 : index
    %c0_5 = arith.constant 0 : index
    %9 = vector.load %arg4[%c0_4, %c0_5] : memref<8x256xf32, #tpu.memory_space<vmem>>, vector<8x256xf32>
    tpu.vector_store %arg4[%c0_4, %c0_5], %8 {strides = array<i32>} : memref<8x256xf32, #tpu.memory_space<vmem>>, vector<8x256xf32>,
    return
  }
  func.func @transform_0(%arg0: i32, %arg1: i32) -> (i32, i32) {
    %c0_i32 = arith.constant 0 : i32
    %c0_i32_0 = arith.constant 0 : i32
    return %arg0, %c0_i32 : i32, i32
  }
  func.func @transform_1(%arg0: i32, %arg1: i32) -> (i32, i32) {
    %c0_i32 = arith.constant 0 : i32
    return %arg0, %arg1 : i32, i32
  }
  func.func @transform_2(%arg0: i32, %arg1: i32) -> (i32, i32) {
    %c0_i32 = arith.constant 0 : i32
    return %arg0, %arg1 : i32, i32
  }
}

</mosaic_0001>

<bundles_post_ra>
// kernel: tpu_custom_call.1
= control target key start
LH: loop header
LB: loop body
LE: loop exit
PB: predicated region body
PF: predicated region fallthrough
CT: control target
= control target key end

     0   :  { %7 = vsyncpa [#allocation3], 0  ;;  %s152_s0 = inlined_call_operand.vmem [shape: s32[8,1], index: 0, kind: input, shape index: {}]   ;;  %s153_s1 = inlined_call_operand.hbm [shape: f32[8,256], index: 1, kind: input, shape index: {}]   ;;  %s154_s2 = inlined_call_operand.hbm [shape: f32[8,256], index: 2, kind: output, shape index: {}]  }
   0x1   :  { %8 = vsyncpa [#allocation4], 0  ;;  %s106_s9 = smov [#allocation2]   ;;  %s58_s13 = scalar_lea.hbm %s153_s1, 256 }
   0x2   :  { %s17_s10 = sshll.u32 %s106_s9, 4  ;;  %p59_p0 = scmp.ne.s32.totalorder %s153_s1, %s58_s13  ;;  %s18_s10 = int_to_ptr.vmem [resolvable:$true] %s17_s10 }
   0x3   :  { %p62_p1 = scmp.lt.u32.totalorder %s58_s13, %s153_s1 }
   0x5   :  { %p64_p2 = pnand %p62_p1, %p59_p0 }
   0x7   :  { %67 = shalt.err (!%p64_p2)
}
   0x8   :  { %s68_s18 = scalar_lea.vmem %s18_s10, 256  ;;  %p73_p4 = scmp.lt.s32.totalorder %s18_s10, %s18_s10 }
   0x9   :  { %p69_p3 = scmp.ne.s32.totalorder %s18_s10, %s68_s18  ;;  %p74_p5 = scmp.lt.s32.totalorder %s68_s18, %s68_s18 }
   0xb   :  { %p75_p6 = por %p74_p5, %p73_p4 }
   0xd   :  { %p76_p7 = pnand %p75_p6, %p69_p3 }
   0xf   :  { %79 = shalt.err (!%p76_p7)
}
  0x10   :  { %20 = dma.hbm_to_vmem [thread:$0]  %s153_s1, 256, %s18_s10, [#allocation3]  }
  0x11   :  { %102 = dma.done.wait [#allocation3], 256  }
  0x12   :  { %103 = vsyncadd [#allocation3], 4294967040  ;;  %v107_v0 = vmov 0   ;;  %v24_v1 = vld [vmem:[%s152_s0] sm:$0xff]  ;;  %v108_v2 = vmov 0.0   ;;  %v28_v5 = vld [vmem:[#allocation2 + $0x8] sm:$0xff] }
  0x13   :  { %57 = vset.pattern.permute.xlu0 %v107_v0  ;;  %vm25_vm0 = vcmp.lt.s32.totalorder %v24_v1, 1073741824  ;;  %v27_v4 = vld [vmem:[#allocation2] sm:$0xff]  ;;  %s109_s23 = smov [#allocation5]  }
  0x14   :  { %v26_v3 = vsel %vm25_vm0, 2.0, %v108_v2  ;;  %s44_s24 = sshll.u32 %s109_s23, 4  ;;  %s45_s24 = int_to_ptr.vmem [resolvable:$true] %s44_s24 }
  0x15   :  { %31 = vperm.xlu0 %57, %v26_v3   ;;  %s80_s1 = scalar_lea.vmem %s45_s24, 256  ;;  %p85_p9 = scmp.lt.s32.totalorder %s45_s24, %s45_s24 }
  0x16   :  { %p81_p8 = scmp.ne.s32.totalorder %s45_s24, %s80_s1  ;;  %p86_p10 = scmp.lt.s32.totalorder %s80_s1, %s80_s1 }
  0x18   :  { %p87_p11 = por %p86_p10, %p85_p9 }
  0x1a   :  { %p88_p12 = pnand %p87_p11, %p81_p8 }
  0x94   :  { %v32_v6 = vpop.permute.xlu0 %31 }
  0x95   :  { %v34_v7 = vmul.f32 %v32_v6, %v27_v4  ;;  %v35_v8 = vmul.f32 %v32_v6, %v28_v5 }
  0x97   :  { %36 = vst [vmem:[#allocation5] sm:$0xff] %v34_v7  ;;  %37 = vst [vmem:[#allocation5 + $0x8] sm:$0xff] %v35_v8 }
  0x98   :  { %91 = shalt.err (!%p88_p12)
}
  0x99   :  { %s92_s26 = scalar_lea.hbm %s154_s2, 256 }
  0x9a   :  { %p93_p13 = scmp.ne.s32.totalorder %s154_s2, %s92_s26  ;;  %p96_p0 = scmp.lt.u32.totalorder %s92_s26, %s154_s2 }
  0x9c   :  { %p98_p1 = pnand %p96_p0, %p93_p13 }
  0x9e   :  { %101 = shalt.err (!%p98_p1)
}
  0x9f   :  { %47 = dma.vmem_to_hbm [thread:$0]  %s45_s24, 256, %s154_s2, [#allocation4]  }
  0xa0   :  { %104 = dma.done.wait [#allocation4], 256  }
  0xa1   :  { %105 = vsyncadd [#allocation4], 4294967040 }
  0xa2   :  { %51 = vsyncpa [#allocation3], 1 }
  0xa3   :  { %52 = vsyncpa [#allocation4], 1 }

</bundles_post_ra>
